<compile_context>
chip_gen: v7x
topology: tpu7x:2x2x1
jax: 0.10.0
libtpu: 0.0.40
codegen_flags: <defaults>
</compile_context>

<pallas_src>
import functools

import jax
import jax.numpy as jnp
from jax.experimental import pallas as pl
from jax.experimental.pallas import tpu as pltpu

_LANE = 128     # vreg lane width: last dims padded to this
_SUBLANE = 8    # vreg sublane width: batch tiles are multiples of this


def _round_up(n, m):
    return (n + m - 1) // m * m


def _mlp_kernel(x_ref, w1_ref, b1_ref, w2_ref, b2_ref, o_ref):
    # One batch tile: y = sigmoid(relu(x @ W1 + b1) @ W2 + b2)
    x = x_ref[...]                                                    # (TB, Fin_p)
    h = jnp.dot(x, w1_ref[...], preferred_element_type=jnp.float32)   # MXU, f32 acc
    h = jnp.maximum(h + b1_ref[...], 0.0)                             # bias + ReLU (VPU, f32)
    y = jnp.dot(h.astype(w2_ref.dtype), w2_ref[...],
                preferred_element_type=jnp.float32)                   # MXU, f32 acc
    y = y + b2_ref[...]
    o_ref[...] = jax.nn.sigmoid(y).astype(o_ref.dtype)                # exp on EUP (free slot)


@functools.partial(jax.jit, static_argnames=("block_batch",))
def classification_model_forward(x, w1, b1, w2, b2, *, block_batch=512):
    """x: (B, F_in) f32, w1: (F_in, H), b1: (H,), w2: (H, F_out), b2: (F_out,)
    -> (B, F_out) f32."""
    B, F_in = x.shape
    H = w1.shape[1]
    F_out = w2.shape[1]

    # Lane-pad all feature dims to 128 so loads/stores are unmasked (no
    # vst.msk partial stores on the 3-wide output) and MXU tiles are dense.
    # Zero padding is numerically inert: padded x-cols hit zero W1 rows,
    # padded H columns get zero weight+bias (ReLU(0)=0), padded output
    # columns are sliced off below. Padded batch rows are also sliced off.
    F_in_p = _round_up(F_in, _LANE)
    H_p = _round_up(H, _LANE)
    F_out_p = _round_up(F_out, _LANE)

    # Batch tile: multiple of 8 sublanes, capped by block_batch. At TB=512,
    # 128-lane f32: 2*(TB*F_in_p + TB*F_out_p)*4B double-buffered tiles plus
    # resident weights ≈ 2.2 MiB — fits under every generation's scoped-VMEM
    # default (16 MiB v5e, 32 MiB v6e/v7x), so no vmem_limit_bytes needed.
    TB = min(block_batch, _round_up(B, _SUBLANE))
    B_p = _round_up(B, TB)

    dtype = x.dtype
    x_p = jnp.zeros((B_p, F_in_p), dtype).at[:B, :F_in].set(x)
    w1_p = jnp.zeros((F_in_p, H_p), w1.dtype).at[:F_in, :H].set(w1)
    b1_p = jnp.zeros((1, H_p), b1.dtype).at[0, :H].set(b1)
    w2_p = jnp.zeros((H_p, F_out_p), w2.dtype).at[:H, :F_out].set(w2)
    b2_p = jnp.zeros((1, F_out_p), b2.dtype).at[0, :F_out].set(b2)

    grid = (B_p // TB,)

    flops = (2 * B_p * F_in_p * H_p            # x @ W1
             + 2 * B_p * H_p * F_out_p         # h @ W2
             + 3 * B_p * (H_p + F_out_p))      # bias adds, ReLU, sigmoid misc
    bytes_accessed = 4 * (B_p * F_in_p + F_in_p * H_p + H_p
                          + H_p * F_out_p + F_out_p + B_p * F_out_p)

    out_p = pl.pallas_call(
        _mlp_kernel,
        out_shape=jax.ShapeDtypeStruct((B_p, F_out_p), dtype),
        grid=grid,
        in_specs=[
            # x: batch-tiled, streamed (double-buffered) across the grid.
            pl.BlockSpec((TB, F_in_p), lambda i: (i, 0)),
            # Weights / biases: constant index_map -> VMEM-resident across grid.
            pl.BlockSpec((F_in_p, H_p), lambda i: (0, 0)),
            pl.BlockSpec((1, H_p), lambda i: (0, 0)),
            pl.BlockSpec((H_p, F_out_p), lambda i: (0, 0)),
            pl.BlockSpec((1, F_out_p), lambda i: (0, 0)),
        ],
        out_specs=pl.BlockSpec((TB, F_out_p), lambda i: (i, 0)),
        compiler_params=pltpu.CompilerParams(
            # Batch tiles are fully independent -> legal to shard across cores.
            dimension_semantics=("parallel",),
        ),
        cost_estimate=pl.CostEstimate(
            flops=flops,
            transcendentals=B_p * F_out_p,
            bytes_accessed=bytes_accessed,
        ),
    )(x_p, w1_p, b1_p, w2_p, b2_p)

    # Strip batch / lane padding outside the kernel (static slice, XLA-fused).
    return out_p[:B, :F_out]


def _reference(x, w1, b1, w2, b2):
    h = jnp.maximum(x @ w1 + b1, 0.0)
    return jax.nn.sigmoid(h @ w2 + b2)


if __name__ == "__main__":
    # Small shapes consistent with the module: batch=8, input_features=4,
    # hidden_units=8 (default), output_features=3.
    B, F_IN, HID, F_OUT = 8, 4, 8, 3

    key = jax.random.PRNGKey(0)
    kx, kw1, kb1, kw2, kb2 = jax.random.split(key, 5)

    x = jax.random.normal(kx, (B, F_IN), dtype=jnp.float32)

    # Deterministic parameter init (uniform, scaled like PyTorch's Linear default).
    bound1 = 1.0 / jnp.sqrt(jnp.float32(F_IN))
    w1 = jax.random.uniform(kw1, (F_IN, HID), jnp.float32, -bound1, bound1)
    b1 = jax.random.uniform(kb1, (HID,), jnp.float32, -bound1, bound1)
    bound2 = 1.0 / jnp.sqrt(jnp.float32(HID))
    w2 = jax.random.uniform(kw2, (HID, F_OUT), jnp.float32, -bound2, bound2)
    b2 = jax.random.uniform(kb2, (F_OUT,), jnp.float32, -bound2, bound2)

    out = classification_model_forward(x, w1, b1, w2, b2)
    out = jax.block_until_ready(out)

    ref = _reference(x, w1, b1, w2, b2)
    assert out.shape == (B, F_OUT)
    assert jnp.allclose(out, ref, atol=1e-5, rtol=1e-5)

    print("KERNEL_OK")
</pallas_src>

<mosaic_0001>
module attributes {stable_mosaic.version = 11 : i64} {
  func.func @_mlp_kernel(%arg0: i32, %arg1: memref<8x128xf32, #tpu.memory_space<vmem>>, %arg2: memref<128x128xf32, #tpu.memory_space<vmem>>, %arg3: memref<1x128xf32, #tpu.memory_space<vmem>>, %arg4: memref<128x128xf32, #tpu.memory_space<vmem>>, %arg5: memref<1x128xf32, #tpu.memory_space<vmem>>, %arg6: memref<8x128xf32, #tpu.memory_space<vmem>>) attributes {dimension_semantics = [#tpu.dimension_semantics<parallel>], iteration_bounds = array<i64: 1>, scalar_prefetch = 0 : i64, scratch_operands = 0 : i64, tpu.core_type = #tpu.core_type<tc>, window_params = [{transform_indices = @transform_0, window_bounds = array<i64: 8, 128>}, {pipeline_mode = #tpu.pipeline_mode<synchronous>, transform_indices = @transform_1, window_bounds = array<i64: 128, 128>}, {pipeline_mode = #tpu.pipeline_mode<synchronous>, transform_indices = @transform_2, window_bounds = array<i64: 1, 128>}, {pipeline_mode = #tpu.pipeline_mode<synchronous>, transform_indices = @transform_3, window_bounds = array<i64: 128, 128>}, {pipeline_mode = #tpu.pipeline_mode<synchronous>, transform_indices = @transform_4, window_bounds = array<i64: 1, 128>}, {transform_indices = @transform_5, window_bounds = array<i64: 8, 128>}]} {
    %c0 = arith.constant 0 : index
    %c0_0 = arith.constant 0 : index
    %0 = vector.load %arg1[%c0, %c0_0] : memref<8x128xf32, #tpu.memory_space<vmem>>, vector<8x128xf32>
    %c0_1 = arith.constant 0 : index
    %c0_2 = arith.constant 0 : index
    %1 = vector.load %arg2[%c0_1, %c0_2] : memref<128x128xf32, #tpu.memory_space<vmem>>, vector<128x128xf32>
    %cst = arith.constant dense<0.000000e+00> : vector<8x128xf32>
    %2 = tpu.matmul %0, %1, %cst {dimension_numbers = #tpu.dot_dimension_numbers<[1], [0], [0], [1], [0, 0, 1, 1], [], []>} : vector<8x128xf32>, vector<128x128xf32>, vector<8x128xf32> -> vector<8x128xf32>
    %c0_3 = arith.constant 0 : index
    %c0_4 = arith.constant 0 : index
    %3 = vector.load %arg3[%c0_3, %c0_4] : memref<1x128xf32, #tpu.memory_space<vmem>>, vector<1x128xf32>
    %4 = vector.broadcast %3 : vector<1x128xf32> to vector<8x128xf32>
    %5 = arith.addf %2, %4 : vector<8x128xf32>
    %cst_5 = arith.constant 0.000000e+00 : f32
    %6 = vector.broadcast %cst_5 : f32 to vector<8x128xf32>
    %7 = arith.maximumf %5, %6 : vector<8x128xf32>
    %c0_6 = arith.constant 0 : index
    %c0_7 = arith.constant 0 : index
    %8 = vector.load %arg4[%c0_6, %c0_7] : memref<128x128xf32, #tpu.memory_space<vmem>>, vector<128x128xf32>
    %cst_8 = arith.constant dense<0.000000e+00> : vector<8x128xf32>
    %9 = tpu.matmul %7, %8, %cst_8 {dimension_numbers = #tpu.dot_dimension_numbers<[1], [0], [0], [1], [0, 0, 1, 1], [], []>} : vector<8x128xf32>, vector<128x128xf32>, vector<8x128xf32> -> vector<8x128xf32>
    %c0_9 = arith.constant 0 : index
    %c0_10 = arith.constant 0 : index
    %10 = vector.load %arg5[%c0_9, %c0_10] : memref<1x128xf32, #tpu.memory_space<vmem>>, vector<1x128xf32>
    %11 = vector.broadcast %10 : vector<1x128xf32> to vector<8x128xf32>
    %12 = arith.addf %9, %11 : vector<8x128xf32>
    %13 = arith.negf %12 : vector<8x128xf32>
    %14 = math.exp %13 : vector<8x128xf32>
    %cst_11 = arith.constant 1.000000e+00 : f32
    %15 = vector.broadcast %cst_11 : f32 to vector<8x128xf32>
    %16 = arith.addf %15, %14 : vector<8x128xf32>
    %17 = arith.divf %15, %16 : vector<8x128xf32>
    %c0_12 = arith.constant 0 : index
    %c0_13 = arith.constant 0 : index
    %18 = vector.load %arg6[%c0_12, %c0_13] : memref<8x128xf32, #tpu.memory_space<vmem>>, vector<8x128xf32>
    tpu.vector_store %arg6[%c0_12, %c0_13], %17 {strides = array<i32>} : memref<8x128xf32, #tpu.memory_space<vmem>>, vector<8x128xf32>,
    return
  }
  func.func @transform_0(%arg0: i32) -> (i32, i32) {
    %c0_i32 = arith.constant 0 : i32
    %c0_i32_0 = arith.constant 0 : i32
    return %arg0, %c0_i32 : i32, i32
  }
  func.func @transform_1(%arg0: i32) -> (i32, i32) {
    %c0_i32 = arith.constant 0 : i32
    %c0_i32_0 = arith.constant 0 : i32
    %c0_i32_1 = arith.constant 0 : i32
    return %c0_i32, %c0_i32_0 : i32, i32
  }
  func.func @transform_2(%arg0: i32) -> (i32, i32) {
    %c0_i32 = arith.constant 0 : i32
    %c0_i32_0 = arith.constant 0 : i32
    %c0_i32_1 = arith.constant 0 : i32
    return %c0_i32, %c0_i32_0 : i32, i32
  }
  func.func @transform_3(%arg0: i32) -> (i32, i32) {
    %c0_i32 = arith.constant 0 : i32
    %c0_i32_0 = arith.constant 0 : i32
    %c0_i32_1 = arith.constant 0 : i32
    return %c0_i32, %c0_i32_0 : i32, i32
  }
  func.func @transform_4(%arg0: i32) -> (i32, i32) {
    %c0_i32 = arith.constant 0 : i32
    %c0_i32_0 = arith.constant 0 : i32
    %c0_i32_1 = arith.constant 0 : i32
    return %c0_i32, %c0_i32_0 : i32, i32
  }
  func.func @transform_5(%arg0: i32) -> (i32, i32) {
    %c0_i32 = arith.constant 0 : i32
    %c0_i32_0 = arith.constant 0 : i32
    return %arg0, %c0_i32 : i32, i32
  }
}

</mosaic_0001>

<bundles_post_ra>
// kernel: classification_model_forward.1
= control target key start
LH: loop header
LB: loop body
LE: loop exit
PB: predicated region body
PF: predicated region fallthrough
CT: control target
= control target key end

     0   :  { %v381_v0 = vmov 0.0|0.0   ;;  %vm382_vm0 = vmmov 0   ;;  %v383_v4 = vmov 0.0   ;;  %s538_s1 = inlined_call_operand.vmem [shape: f32[128,128], index: 1, kind: input, shape index: {}]   ;;  %s539_s3 = inlined_call_operand.vmem [shape: f32[128,128], index: 3, kind: input, shape index: {}]   ;;  %s540_s0 = inlined_call_operand.vmem [shape: f32[8,128], index: 0, kind: input, shape index: {}]   ;;  %s541_s2 = inlined_call_operand.vmem [shape: f32[1,128], index: 2, kind: input, shape index: {}]   ;;  %s542_s4 = inlined_call_operand.vmem [shape: f32[1,128], index: 4, kind: input, shape index: {}]   ;;  %s543_s5 = inlined_call_operand.vmem [shape: f32[8,128], index: 5, kind: output, shape index: {}]  }
   0x1   :  { %326 = vmatprep.subr.bf16.mxu0 %v381_v0  ;;  %v21_v1 = vld [vmem:[%s538_s1] sm:$0xff]  ;;  %v22_v2 = vld [vmem:[%s538_s1 + $0x8] sm:$0xff]  ;;  %v23_v3 = vld [vmem:[%s538_s1 + $0x10] sm:$0xff]  ;;  %288 = vmatprep.mubr.msk.f32.mxu0 %vm382_vm0, %v383_v4 }
   0x2   :  { %v327_v5 = vpack.c.bf16 %v22_v2, %v21_v1  ;;  %v24_v6 = vld [vmem:[%s538_s1 + $0x18] sm:$0xff]  ;;  %350 = vmatprep.subr.bf16.mxu1 %v381_v0  ;;  %323 = vmatprep.mubr.msk.f32.mxu1 %vm382_vm0, %v383_v4  ;;  %v25_v8 = vld [vmem:[%s538_s1 + $0x20] sm:$0xff]  ;;  %v26_v9 = vld [vmem:[%s538_s1 + $0x28] sm:$0xff] }
   0x3   :  { %v330_v7 = vpack.c.bf16 %v24_v6, %v23_v3  ;;  %v115_v10 = vld [vmem:[%s539_s3] sm:$0xff]  ;;  %v116_v11 = vld [vmem:[%s539_s3 + $0x8] sm:$0xff]  ;;  %v117_v12 = vld [vmem:[%s539_s3 + $0x10] sm:$0xff]  ;;  %v333_v14 = vpack.c.bf16 %v26_v9, %v25_v8 }
   0x4   :  { %328 = vmatpush3.bf16.msra.mxu0 %v327_v5  ;;  %v118_v13 = vld [vmem:[%s539_s3 + $0x18] sm:$0xff]  ;;  %v351_v15 = vpack.c.bf16 %v116_v11, %v115_v10  ;;  %v27_v16 = vld [vmem:[%s538_s1 + $0x30] sm:$0xff]  ;;  %v119_v19 = vld [vmem:[%s539_s3 + $0x20] sm:$0xff] }
   0x5   :  { %329 = vmatprep.subr.bf16.mxu0 %v381_v0  ;;  %v28_v17 = vld [vmem:[%s538_s1 + $0x38] sm:$0xff]  ;;  %v354_v18 = vpack.c.bf16 %v118_v13, %v117_v12  ;;  %v120_v20 = vld [vmem:[%s539_s3 + $0x28] sm:$0xff]  ;;  %v29_v22 = vld [vmem:[%s538_s1 + $0x40] sm:$0xff] }
   0x6   :  { %352 = vmatpush3.bf16.msra.mxu1 %v351_v15  ;;  %v336_v21 = vpack.c.bf16 %v28_v17, %v27_v16  ;;  %v30_v23 = vld [vmem:[%s538_s1 + $0x48] sm:$0xff]  ;;  %v357_v24 = vpack.c.bf16 %v120_v20, %v119_v19  ;;  %v121_v25 = vld [vmem:[%s539_s3 + $0x30] sm:$0xff]  ;;  %v122_v26 = vld [vmem:[%s539_s3 + $0x38] sm:$0xff] }
   0x7   :  { %353 = vmatprep.subr.bf16.mxu1 %v381_v0  ;;  %v339_v27 = vpack.c.bf16 %v30_v23, %v29_v22  ;;  %v31_v28 = vld [vmem:[%s538_s1 + $0x50] sm:$0xff]  ;;  %v32_v29 = vld [vmem:[%s538_s1 + $0x58] sm:$0xff]  ;;  %v360_v30 = vpack.c.bf16 %v122_v26, %v121_v25  ;;  %v123_v31 = vld [vmem:[%s539_s3 + $0x40] sm:$0xff] }
   0x8   :  { %331 = vmatpush3.bf16.msra.mxu0 %v330_v7  ;;  %v124_v32 = vld [vmem:[%s539_s3 + $0x48] sm:$0xff]  ;;  %v342_v33 = vpack.c.bf16 %v32_v29, %v31_v28  ;;  %v33_v34 = vld [vmem:[%s538_s1 + $0x60] sm:$0xff]  ;;  %v125_v37 = vld [vmem:[%s539_s3 + $0x50] sm:$0xff] }
   0x9   :  { %332 = vmatprep.subr.bf16.mxu0 %v381_v0  ;;  %v34_v35 = vld [vmem:[%s538_s1 + $0x68] sm:$0xff]  ;;  %v363_v36 = vpack.c.bf16 %v124_v32, %v123_v31  ;;  %v126_v38 = vld [vmem:[%s539_s3 + $0x58] sm:$0xff]  ;;  %v35_v40 = vld [vmem:[%s538_s1 + $0x70] sm:$0xff] }
   0xa   :  { %355 = vmatpush3.bf16.msra.mxu1 %v354_v18  ;;  %v345_v39 = vpack.c.bf16 %v34_v35, %v33_v34  ;;  %v36_v41 = vld [vmem:[%s538_s1 + $0x78] sm:$0xff]  ;;  %v366_v42 = vpack.c.bf16 %v126_v38, %v125_v37  ;;  %v127_v43 = vld [vmem:[%s539_s3 + $0x60] sm:$0xff]  ;;  %v128_v44 = vld [vmem:[%s539_s3 + $0x68] sm:$0xff] }
   0xb   :  { %356 = vmatprep.subr.bf16.mxu1 %v381_v0  ;;  %v348_v45 = vpack.c.bf16 %v36_v41, %v35_v40  ;;  %v369_v46 = vpack.c.bf16 %v128_v44, %v127_v43  ;;  %v20_v47 = vld [vmem:[%s540_s0] sm:$0xff]  ;;  %v129_v48 = vld [vmem:[%s539_s3 + $0x70] sm:$0xff]  ;;  %v130_v49 = vld [vmem:[%s539_s3 + $0x78] sm:$0xff] }
   0xc   :  { %334 = vmatpush3.bf16.msra.mxu0 %v333_v14  ;;  %v372_v50 = vpack.c.bf16 %v130_v49, %v129_v48  ;;  %v219_v51 = vld [vmem:[%s541_s2] ss:$0 sm:$0xff] }
   0xd   :  { %335 = vmatprep.subr.bf16.mxu0 %v381_v0  ;;  %v220_v56 = vld [vmem:[%s542_s4] ss:$0 sm:$0xff] }
   0xe   :  { %358 = vmatpush3.bf16.msra.mxu1 %v357_v24 }
   0xf   :  { %359 = vmatprep.subr.bf16.mxu1 %v381_v0 }
  0x10   :  { %337 = vmatpush3.bf16.msra.mxu0 %v336_v21 }
  0x11   :  { %338 = vmatprep.subr.bf16.mxu0 %v381_v0 }
  0x12   :  { %361 = vmatpush3.bf16.msra.mxu1 %v360_v30 }
  0x13   :  { %362 = vmatprep.subr.bf16.mxu1 %v381_v0 }
  0x14   :  { %340 = vmatpush3.bf16.msra.mxu0 %v339_v27 }
  0x15   :  { %341 = vmatprep.subr.bf16.mxu0 %v381_v0 }
  0x16   :  { %364 = vmatpush3.bf16.msra.mxu1 %v363_v36 }
  0x17   :  { %365 = vmatprep.subr.bf16.mxu1 %v381_v0 }
  0x18   :  { %343 = vmatpush3.bf16.msra.mxu0 %v342_v33 }
  0x19   :  { %344 = vmatprep.subr.bf16.mxu0 %v381_v0 }
  0x1a   :  { %367 = vmatpush3.bf16.msra.mxu1 %v366_v42 }
  0x1b   :  { %368 = vmatprep.subr.bf16.mxu1 %v381_v0 }
  0x1c   :  { %346 = vmatpush3.bf16.msra.mxu0 %v345_v39 }
  0x1d   :  { %347 = vmatprep.subr.bf16.mxu0 %v381_v0 }
  0x1e   :  { %370 = vmatpush3.bf16.msra.mxu1 %v369_v46 }
  0x1f   :  { %371 = vmatprep.subr.bf16.mxu1 %v381_v0 }
  0x20   :  { %349 = vmatpush3.bf16.msra.mxu0 %v348_v45 }
  0x22   :  { %373 = vmatpush3.bf16.msra.mxu1 %v372_v50 }
  0x23   :  { %289 = vmatmul.mubr.f32.vlgmr.msra.gmra.mrb[0].mxu0 %v20_v47 }
  0xf6   :  { %v110_v52 = vpop.f32.mrb[0].mxu0 }
  0xf7   :  { %v111_v53 = vadd.f32 %v219_v51, %v110_v52  ;;  %v290_v54 = vpop.f32.mrb[1].mxu0 }
  0xf9   :  { %v114_v55 = vmax.f32 %v111_v53, 0.0 }
  0xfb   :  { %324 = vmatmul.mubr.f32.vlgmr.msra.gmra.mrb[0].mxu1 %v114_v55 }
 0x1ce   :  { %v204_v57 = vpop.f32.mrb[0].mxu1 }
 0x1cf   :  { %v205_v58 = vadd.f32 %v220_v56, %v204_v57  ;;  %v325_v59 = vpop.f32.mrb[1].mxu1 }
 0x1d1   :  { %v221_v60 = vmul.f32 -1.442695, %v205_v58 }
 0x1d3   :  { %377 = vpow2.f32 %v221_v60 }
 0x1dd   :  { %v378_v61 = vpop.eup %377 }
 0x1de   :  { %v211_v62 = vadd.f32 1.0, %v378_v61 }
 0x1e0   :  { %379 = vrcp.f32 %v211_v62 }
 0x1ea   :  { %v380_v63 = vpop.eup %379 }
 0x1eb   :  { %214 = vst [vmem:[%s543_s5] sm:$0xff] %v380_v63 }

</bundles_post_ra>
